<compile_context>
chip_gen: v6e
topology: v6e:2x2x1
jax: 0.10.0
libtpu: 0.0.40
codegen_flags: <defaults>
</compile_context>

<pallas_src>
import functools

import numpy as np
import jax
import jax.numpy as jnp
from jax import lax
from jax.experimental import pallas as pl
from jax.experimental.pallas import tpu as pltpu

D_PART = 3          # particle state dims: [x (Real), y (Real), theta (Angle)]
D_TRANS = 4         # transformed dims:    [x, y, sin(theta), cos(theta)]
LATENT = 32         # latent_space
HIGHEST = jax.lax.Precision.HIGHEST

_PI = float(np.pi)
_TWO_PI = float(2.0 * np.pi)
_INV_TWO_PI = float(1.0 / (2.0 * np.pi))

# Packed transformed-row layout (8 rows): group A uses rows (0,1,4,6) = [x,y,sin,cos],
# group B uses rows (2,3,5,7).  Particle/eps/output slabs use 6 rows:
# [x_A, y_A, x_B, y_B, th_A, th_B].
_ROWS_A = (0, 1, 4, 6)
_ROWS_B = (2, 3, 5, 7)


def _ffbs_kernel(p_ref, e_ref, w1_ref, b1_ref, w2_ref, b2_ref, w3_ref, b3_ref,
                 rsf_ref, std_ref, out_ref, *, chunk, trips, unroll):
    # Loop-invariant small operands (hoisted out of the chunk loop).
    w1 = w1_ref[...]            # (64, 8)   block-diag(+perm) of W1^T
    b1 = b1_ref[...]            # (64, 1)
    w2 = w2_ref[...]            # (64, 64)  block-diag of W2^T
    b2 = b2_ref[...]            # (64, 1)
    w3 = w3_ref[...]            # (8, 64)   block-diag(+perm) of W3^T
    b3 = b3_ref[...]            # (8, 1)
    rsf = rsf_ref[...]          # (8, 1)    residual_scale_factor (packed rows)
    std6 = std_ref[...]         # (6, 1)    sigmoid(exp(log_bw)) * {2,2,0.5} (packed rows)
    std_r = std6[0:4, :]
    std_t = std6[4:6, :]

    def body(ci, carry):
        c0 = pl.multiple_of(ci * chunk, chunk)
        p = p_ref[:, pl.ds(c0, chunk)]                 # (6, C)
        e = e_ref[:, pl.ds(c0, chunk)]                 # (6, C)

        # _transform_particles (no mask): [x, y, sin th, cos th] for both packed groups,
        # assembled as a value (no VMEM scratch round trip).
        th = p[4:6, :]
        t8 = jnp.concatenate([p[0:4, :], jnp.sin(th), jnp.cos(th)], axis=0)   # (8, C)

        # MLP Linear(4->32) ReLU Linear(32->32) ReLU Linear(32->4), both groups at once,
        # as W^T @ x + b with default MXU precision and f32 accumulation.
        h = jnp.maximum(jnp.dot(w1, t8, preferred_element_type=jnp.float32) + b1, 0.0)
        h = jnp.maximum(jnp.dot(w2, h, preferred_element_type=jnp.float32) + b2, 0.0)
        o = jnp.dot(w3, h, preferred_element_type=jnp.float32) + b3           # (8, C)

        # means = transformed + (sigmoid(out)*2 - 1) * residual_scale_factor
        m8 = t8 + (jax.nn.sigmoid(o) * 2.0 - 1.0) * rsf

        # Normal dims (rows [x_A, y_A, x_B, y_B]): mean + std * eps.
        real = m8[0:4, :] + std_r * e[0:4, :]

        # VonMises-style dim: atan2(sin-part, cos-part) mean, add noise, wrap to
        # [-pi, pi) with pure-VPU modulo arithmetic (torch-equivalent on the circle).
        mean_th = jnp.arctan2(m8[4:6, :], m8[6:8, :])
        raw = mean_th + std_t * e[4:6, :]
        wrapped = raw - _TWO_PI * jnp.floor((raw + _PI) * _INV_TWO_PI)

        out_ref[:, pl.ds(c0, chunk)] = jnp.concatenate([real, wrapped], axis=0)
        return carry

    lax.fori_loop(0, trips, body, 0, unroll=unroll)


def ffbs_forward_packed(p_packed, e_packed, packed_params, *, tile_m=8192, chunk=256):
    """Forward pass on the packed lane-dense layout (no wrapper layout passes).

    p_packed / e_packed: (6, Mh) float32 with rows [x_A, y_A, x_B, y_B, th_A, th_B];
    each column holds two independent particles.  Keep the state in this layout
    end-to-end for best performance.
    """
    assert p_packed.shape[0] == 2 * D_PART and e_packed.shape == p_packed.shape
    assert tile_m >= 128 and tile_m % 128 == 0 and chunk % 128 == 0
    mh = p_packed.shape[1]

    # Grid sizing: large lane-dense blocks to amortize the per-grid-step overhead,
    # but keep >=2 parallel blocks when possible (v7x has 2 TensorCores).
    n128 = pl.cdiv(mh, 128)
    nblk = max(pl.cdiv(n128, tile_m // 128), min(2, n128))
    tm = 128 * pl.cdiv(n128, nblk)
    mh_cov = nblk * tm
    if mh_cov != mh:                 # rare ragged remainder only
        pad = ((0, 0), (0, mh_cov - mh))
        p_packed = jnp.pad(p_packed, pad)
        e_packed = jnp.pad(e_packed, pad)

    c = chunk if tm % chunk == 0 else 128
    trips = tm // c
    unroll = True if trips <= 8 else 4

    w1bd, b1bd, w2bd, b2bd, w3bd, b3bd, rsf8, std6 = packed_params

    col6 = pl.BlockSpec((2 * D_PART, tm), lambda i: (0, i))
    full = lambda a: pl.BlockSpec(a.shape, lambda i: (0, 0))

    out = pl.pallas_call(
        functools.partial(_ffbs_kernel, chunk=c, trips=trips, unroll=unroll),
        out_shape=jax.ShapeDtypeStruct((2 * D_PART, mh_cov), jnp.float32),
        grid_spec=pltpu.PrefetchScalarGridSpec(
            num_scalar_prefetch=0,
            grid=(nblk,),
            in_specs=[col6, col6, full(w1bd), full(b1bd), full(w2bd), full(b2bd),
                      full(w3bd), full(b3bd), full(rsf8), full(std6)],
            out_specs=col6,
        ),
        compiler_params=pltpu.CompilerParams(
            dimension_semantics=("parallel",)),
    )(p_packed, e_packed, w1bd, b1bd, w2bd, b2bd, w3bd, b3bd, rsf8, std6)

    return out if mh_cov == mh else out[:, :mh]


def pack_params(params):
    """Fold weights into block-diagonal 'both groups at once' form and fold the
    bandwidth / residual-scale math into tiny column constants (done once)."""
    w1, b1, w2, b2, w3, b3, rsf, logbw = params
    f32 = jnp.float32
    w1t = w1.T.astype(f32)              # (32, 4)  feature order [x, y, sin, cos]
    w2t = w2.T.astype(f32)              # (32, 32)
    w3t = w3.T.astype(f32)              # (4, 32)  output order  [x, y, sin, cos]
    ra = jnp.asarray(_ROWS_A)
    rb = jnp.asarray(_ROWS_B)

    w1bd = jnp.zeros((2 * LATENT, 2 * D_TRANS), f32)
    w1bd = w1bd.at[:LATENT, ra].set(w1t).at[LATENT:, rb].set(w1t)
    w2bd = jnp.zeros((2 * LATENT, 2 * LATENT), f32)
    w2bd = w2bd.at[:LATENT, :LATENT].set(w2t).at[LATENT:, LATENT:].set(w2t)
    w3bd = jnp.zeros((2 * D_TRANS, 2 * LATENT), f32)
    w3bd = w3bd.at[ra, :LATENT].set(w3t).at[rb, LATENT:].set(w3t)

    b1v = b1.reshape(LATENT).astype(f32)
    b2v = b2.reshape(LATENT).astype(f32)
    b3v = b3.reshape(D_TRANS).astype(f32)
    b1bd = jnp.concatenate([b1v, b1v]).reshape(2 * LATENT, 1)
    b2bd = jnp.concatenate([b2v, b2v]).reshape(2 * LATENT, 1)
    b3bd = jnp.zeros((2 * D_TRANS,), f32).at[ra].set(b3v).at[rb].set(b3v)
    b3bd = b3bd.reshape(2 * D_TRANS, 1)

    rsfv = rsf.reshape(D_TRANS).astype(f32)
    rsf8 = jnp.zeros((2 * D_TRANS,), f32).at[ra].set(rsfv).at[rb].set(rsfv)
    rsf8 = rsf8.reshape(2 * D_TRANS, 1)

    # Real dims -> sigmoid(exp(log_bw)) * 2 ; Angle dim -> sigmoid(exp(log_bw)) * 0.5
    bw = jax.nn.sigmoid(jnp.exp(logbw.reshape(D_PART).astype(f32)))
    s = bw * jnp.asarray([2.0, 2.0, 0.5], f32)
    std6 = jnp.stack([s[0], s[1], s[0], s[1], s[2], s[2]]).reshape(2 * D_PART, 1)
    return (w1bd, b1bd, w2bd, b2bd, w3bd, b3bd, rsf8, std6)


def pack_state(x_bnd):
    """(B, N, 3) -> packed lane-dense (6, Mh) slab (compat-layer plumbing only)."""
    B, N, D = x_bnd.shape
    assert D == D_PART
    m = B * N
    xt = x_bnd.reshape(m, D).T.astype(jnp.float32)          # (3, M)
    m_pad = 256 * pl.cdiv(m, 256)                           # 2 groups x 128 lanes
    if m_pad != m:
        xt = jnp.pad(xt, ((0, 0), (0, m_pad - m)))
    mh = m_pad // 2
    a, b = xt[:, :mh], xt[:, mh:]
    return jnp.concatenate([a[0:2], b[0:2], a[2:3], b[2:3]], axis=0)   # (6, Mh)


def unpack_state(packed, B, N):
    """(6, Mh) packed slab -> (B, N, 3) (compat-layer plumbing only)."""
    a = jnp.stack([packed[0], packed[1], packed[4]], axis=1)   # (Mh, 3) group A
    b = jnp.stack([packed[2], packed[3], packed[5]], axis=1)   # (Mh, 3) group B
    return jnp.concatenate([a, b], axis=0)[: B * N].reshape(B, N, D_PART)


@functools.partial(jax.jit, static_argnames=("tile_m", "chunk"))
def traditional_ffbs_forward(particles, eps, params, *, tile_m=8192, chunk=256):
    """Module-compatible entry point: (B, N, 3) in / (B, N, 3) out.

    Performance-critical callers should hold the state packed and call
    ffbs_forward_packed directly (no per-step pack/unpack layout passes)."""
    B, N, _ = particles.shape
    packed_params = pack_params(params)
    out = ffbs_forward_packed(pack_state(particles), pack_state(eps), packed_params,
                              tile_m=tile_m, chunk=chunk)
    return unpack_state(out, B, N)


def reference_forward(particles, eps, params):
    """Pure-JAX reference mirroring the PyTorch forward semantics."""
    w1, b1, w2, b2, w3, b3, rsf, logbw = params
    B, N, D = particles.shape
    p = particles.reshape(-1, D)
    e = eps.reshape(-1, D)
    t = jnp.concatenate(
        [p[:, 0:1], p[:, 1:2], jnp.sin(p[:, 2:3]), jnp.cos(p[:, 2:3])], axis=-1)
    h = jnp.maximum(jnp.dot(t, w1, precision=HIGHEST) + b1, 0.0)
    h = jnp.maximum(jnp.dot(h, w2, precision=HIGHEST) + b2, 0.0)
    o = jnp.dot(h, w3, precision=HIGHEST) + b3
    m = t + (jax.nn.sigmoid(o) * 2.0 - 1.0) * rsf
    mean_th = jnp.arctan2(m[:, 2:3], m[:, 3:4])
    bw = jax.nn.sigmoid(jnp.exp(logbw)).reshape(1, D_PART)
    s_x = m[:, 0:1] + bw[:, 0:1] * 2.0 * e[:, 0:1]
    s_y = m[:, 1:2] + bw[:, 1:2] * 2.0 * e[:, 1:2]
    raw = mean_th + bw[:, 2:3] * 0.5 * e[:, 2:3]
    s_th = jnp.arctan2(jnp.sin(raw), jnp.cos(raw))
    return jnp.concatenate([s_x, s_y, s_th], axis=-1).reshape(B, N, D)


def init_params(key):
    ks = jax.random.split(key, 6)
    w1 = jax.random.normal(ks[0], (D_TRANS, LATENT), jnp.float32) * 0.3
    b1 = jax.random.normal(ks[1], (1, LATENT), jnp.float32) * 0.05
    w2 = jax.random.normal(ks[2], (LATENT, LATENT), jnp.float32) * 0.15
    b2 = jax.random.normal(ks[3], (1, LATENT), jnp.float32) * 0.05
    w3 = jax.random.normal(ks[4], (LATENT, D_TRANS), jnp.float32) * 0.15
    b3 = jax.random.normal(ks[5], (1, D_TRANS), jnp.float32) * 0.05
    rsf = jnp.asarray([[0.1, 0.05, 0.2, 0.2]], jnp.float32)          # residual_scale_factor
    logbw = jnp.asarray(np.log([[0.5, 0.5, 0.5]]), jnp.float32)      # log_bandwidths param
    return (w1, b1, w2, b2, w3, b3, rsf, logbw)


def _check(out, ref):
    o = np.asarray(out)
    r = np.asarray(ref)
    assert np.all(np.isfinite(o))
    # Real-number dims: direct comparison.
    np.testing.assert_allclose(o[..., :2], r[..., :2], atol=2e-3, rtol=2e-3)
    # Angle dim: compare on the circle (kernel wraps to [-pi, pi), ref to (-pi, pi]).
    dth = (o[..., 2] - r[..., 2] + np.pi) % (2.0 * np.pi) - np.pi
    np.testing.assert_allclose(dth, np.zeros_like(dth), atol=2e-3)


if __name__ == "__main__":
    key = jax.random.PRNGKey(0)
    k_param, k_part, k_eps = jax.random.split(key, 3)

    params = init_params(k_param)

    # Primary case: batch=2, number_of_particles=512 (M = 1024 -> two parallel blocks).
    B, N = 2, 512
    particles = jax.random.normal(k_part, (B, N, D_PART), jnp.float32)
    eps = jax.random.normal(k_eps, (B, N, D_PART), jnp.float32)     # rsample noise
    out = jax.block_until_ready(traditional_ffbs_forward(particles, eps, params))
    assert out.shape == (B, N, D_PART)
    _check(out, reference_forward(particles, eps, params))

    # Ragged case exercising the remainder/padding path (M not a multiple of 256).
    B2, N2 = 1, 300
    p2 = jax.random.normal(jax.random.PRNGKey(1), (B2, N2, D_PART), jnp.float32)
    e2 = jax.random.normal(jax.random.PRNGKey(2), (B2, N2, D_PART), jnp.float32)
    out2 = jax.block_until_ready(traditional_ffbs_forward(p2, e2, params))
    assert out2.shape == (B2, N2, D_PART)
    _check(out2, reference_forward(p2, e2, params))

    print("KERNEL_OK")
</pallas_src>

<mosaic_0001>
module attributes {stable_mosaic.version = 11 : i64} {
  func.func @_ffbs_kernel(%arg0: i32, %arg1: memref<6x256xf32, #tpu.memory_space<vmem>>, %arg2: memref<6x256xf32, #tpu.memory_space<vmem>>, %arg3: memref<64x8xf32, #tpu.memory_space<vmem>>, %arg4: memref<64x1xf32, #tpu.memory_space<vmem>>, %arg5: memref<64x64xf32, #tpu.memory_space<vmem>>, %arg6: memref<64x1xf32, #tpu.memory_space<vmem>>, %arg7: memref<8x64xf32, #tpu.memory_space<vmem>>, %arg8: memref<8x1xf32, #tpu.memory_space<vmem>>, %arg9: memref<8x1xf32, #tpu.memory_space<vmem>>, %arg10: memref<6x1xf32, #tpu.memory_space<vmem>>, %arg11: memref<6x256xf32, #tpu.memory_space<vmem>>) attributes {dimension_semantics = [#tpu.dimension_semantics<parallel>], iteration_bounds = array<i64: 2>, scalar_prefetch = 0 : i64, scratch_operands = 0 : i64, tpu.core_type = #tpu.core_type<tc>, window_params = [{transform_indices = @transform_0, window_bounds = array<i64: 6, 256>}, {transform_indices = @transform_1, window_bounds = array<i64: 6, 256>}, {pipeline_mode = #tpu.pipeline_mode<synchronous>, transform_indices = @transform_2, window_bounds = array<i64: 64, 8>}, {pipeline_mode = #tpu.pipeline_mode<synchronous>, transform_indices = @transform_3, window_bounds = array<i64: 64, 1>}, {pipeline_mode = #tpu.pipeline_mode<synchronous>, transform_indices = @transform_4, window_bounds = array<i64: 64, 64>}, {pipeline_mode = #tpu.pipeline_mode<synchronous>, transform_indices = @transform_5, window_bounds = array<i64: 64, 1>}, {pipeline_mode = #tpu.pipeline_mode<synchronous>, transform_indices = @transform_6, window_bounds = array<i64: 8, 64>}, {pipeline_mode = #tpu.pipeline_mode<synchronous>, transform_indices = @transform_7, window_bounds = array<i64: 8, 1>}, {pipeline_mode = #tpu.pipeline_mode<synchronous>, transform_indices = @transform_8, window_bounds = array<i64: 8, 1>}, {pipeline_mode = #tpu.pipeline_mode<synchronous>, transform_indices = @transform_9, window_bounds = array<i64: 6, 1>}, {transform_indices = @transform_10, window_bounds = array<i64: 6, 256>}]} {
    %c0 = arith.constant 0 : index
    %c0_0 = arith.constant 0 : index
    %0 = vector.load %arg3[%c0, %c0_0] : memref<64x8xf32, #tpu.memory_space<vmem>>, vector<64x8xf32>
    %c0_1 = arith.constant 0 : index
    %c0_2 = arith.constant 0 : index
    %1 = vector.load %arg4[%c0_1, %c0_2] : memref<64x1xf32, #tpu.memory_space<vmem>>, vector<64x1xf32>
    %c0_3 = arith.constant 0 : index
    %c0_4 = arith.constant 0 : index
    %2 = vector.load %arg5[%c0_3, %c0_4] : memref<64x64xf32, #tpu.memory_space<vmem>>, vector<64x64xf32>
    %c0_5 = arith.constant 0 : index
    %c0_6 = arith.constant 0 : index
    %3 = vector.load %arg6[%c0_5, %c0_6] : memref<64x1xf32, #tpu.memory_space<vmem>>, vector<64x1xf32>
    %c0_7 = arith.constant 0 : index
    %c0_8 = arith.constant 0 : index
    %4 = vector.load %arg7[%c0_7, %c0_8] : memref<8x64xf32, #tpu.memory_space<vmem>>, vector<8x64xf32>
    %c0_9 = arith.constant 0 : index
    %c0_10 = arith.constant 0 : index
    %5 = vector.load %arg8[%c0_9, %c0_10] : memref<8x1xf32, #tpu.memory_space<vmem>>, vector<8x1xf32>
    %c0_11 = arith.constant 0 : index
    %c0_12 = arith.constant 0 : index
    %6 = vector.load %arg9[%c0_11, %c0_12] : memref<8x1xf32, #tpu.memory_space<vmem>>, vector<8x1xf32>
    %c0_13 = arith.constant 0 : index
    %c0_14 = arith.constant 0 : index
    %7 = vector.load %arg10[%c0_13, %c0_14] : memref<6x1xf32, #tpu.memory_space<vmem>>, vector<6x1xf32>
    %8 = vector.extract_strided_slice %7 {offsets = [0, 0], sizes = [4, 1], strides = [1, 1]} : vector<6x1xf32> to vector<4x1xf32>
    %9 = vector.extract_strided_slice %7 {offsets = [4, 0], sizes = [2, 1], strides = [1, 1]} : vector<6x1xf32> to vector<2x1xf32>
    %c0_i32 = arith.constant 0 : i32
    %c256_i32 = arith.constant 256 : i32
    %10 = arith.muli %c0_i32, %c256_i32 : i32
    %11 = tpu.assume_multiple %10, 256 : i32
    %c0_15 = arith.constant 0 : index
    %12 = arith.index_cast %11 : i32 to index
    %13 = vector.load %arg1[%c0_15, %12] : memref<6x256xf32, #tpu.memory_space<vmem>>, vector<6x256xf32>
    %c0_16 = arith.constant 0 : index
    %14 = arith.index_cast %11 : i32 to index
    %15 = vector.load %arg2[%c0_16, %14] : memref<6x256xf32, #tpu.memory_space<vmem>>, vector<6x256xf32>
    %16 = vector.extract_strided_slice %13 {offsets = [4, 0], sizes = [2, 256], strides = [1, 1]} : vector<6x256xf32> to vector<2x256xf32>
    %17 = vector.extract_strided_slice %13 {offsets = [0, 0], sizes = [4, 256], strides = [1, 1]} : vector<6x256xf32> to vector<4x256xf32>
    %18 = math.sin %16 : vector<2x256xf32>
    %19 = math.cos %16 : vector<2x256xf32>
    %20 = tpu.concatenate %17, %18, %19 in 0 : vector<4x256xf32>, vector<2x256xf32>, vector<2x256xf32> -> vector<8x256xf32>
    %cst = arith.constant dense<0.000000e+00> : vector<64x256xf32>
    %21 = tpu.matmul %0, %20, %cst {dimension_numbers = #tpu.dot_dimension_numbers<[1], [0], [0], [1], [0, 0, 1, 1], [], []>} : vector<64x8xf32>, vector<8x256xf32>, vector<64x256xf32> -> vector<64x256xf32>
    %22 = vector.broadcast %1 : vector<64x1xf32> to vector<64x256xf32>
    %23 = arith.addf %21, %22 : vector<64x256xf32>
    %cst_17 = arith.constant 0.000000e+00 : f32
    %24 = vector.broadcast %cst_17 : f32 to vector<64x256xf32>
    %25 = arith.maximumf %23, %24 : vector<64x256xf32>
    %cst_18 = arith.constant dense<0.000000e+00> : vector<64x256xf32>
    %26 = tpu.matmul %2, %25, %cst_18 {dimension_numbers = #tpu.dot_dimension_numbers<[1], [0], [0], [1], [0, 0, 1, 1], [], []>} : vector<64x64xf32>, vector<64x256xf32>, vector<64x256xf32> -> vector<64x256xf32>
    %27 = vector.broadcast %3 : vector<64x1xf32> to vector<64x256xf32>
    %28 = arith.addf %26, %27 : vector<64x256xf32>
    %cst_19 = arith.constant 0.000000e+00 : f32
    %29 = vector.broadcast %cst_19 : f32 to vector<64x256xf32>
    %30 = arith.maximumf %28, %29 : vector<64x256xf32>
    %cst_20 = arith.constant dense<0.000000e+00> : vector<8x256xf32>
    %31 = tpu.matmul %4, %30, %cst_20 {dimension_numbers = #tpu.dot_dimension_numbers<[1], [0], [0], [1], [0, 0, 1, 1], [], []>} : vector<8x64xf32>, vector<64x256xf32>, vector<8x256xf32> -> vector<8x256xf32>
    %32 = vector.broadcast %5 : vector<8x1xf32> to vector<8x256xf32>
    %33 = arith.addf %31, %32 : vector<8x256xf32>
    %34 = arith.negf %33 : vector<8x256xf32>
    %35 = math.exp %34 : vector<8x256xf32>
    %cst_21 = arith.constant 1.000000e+00 : f32
    %36 = vector.broadcast %cst_21 : f32 to vector<8x256xf32>
    %37 = arith.addf %36, %35 : vector<8x256xf32>
    %38 = arith.divf %36, %37 : vector<8x256xf32>
    %cst_22 = arith.constant 2.000000e+00 : f32
    %39 = vector.broadcast %cst_22 : f32 to vector<8x256xf32>
    %40 = arith.mulf %38, %39 : vector<8x256xf32>
    %cst_23 = arith.constant 1.000000e+00 : f32
    %41 = vector.broadcast %cst_23 : f32 to vector<8x256xf32>
    %42 = arith.subf %40, %41 : vector<8x256xf32>
    %43 = vector.broadcast %6 : vector<8x1xf32> to vector<8x256xf32>
    %44 = arith.mulf %42, %43 : vector<8x256xf32>
    %45 = arith.addf %20, %44 : vector<8x256xf32>
    %46 = vector.extract_strided_slice %45 {offsets = [0, 0], sizes = [4, 256], strides = [1, 1]} : vector<8x256xf32> to vector<4x256xf32>
    %47 = vector.extract_strided_slice %15 {offsets = [0, 0], sizes = [4, 256], strides = [1, 1]} : vector<6x256xf32> to vector<4x256xf32>
    %48 = vector.broadcast %8 : vector<4x1xf32> to vector<4x256xf32>
    %49 = arith.mulf %48, %47 : vector<4x256xf32>
    %50 = arith.addf %46, %49 : vector<4x256xf32>
    %51 = vector.extract_strided_slice %45 {offsets = [4, 0], sizes = [2, 256], strides = [1, 1]} : vector<8x256xf32> to vector<2x256xf32>
    %52 = vector.extract_strided_slice %45 {offsets = [6, 0], sizes = [2, 256], strides = [1, 1]} : vector<8x256xf32> to vector<2x256xf32>
    %53 = math.atan2 %51, %52 : vector<2x256xf32>
    %54 = vector.extract_strided_slice %15 {offsets = [4, 0], sizes = [2, 256], strides = [1, 1]} : vector<6x256xf32> to vector<2x256xf32>
    %55 = vector.broadcast %9 : vector<2x1xf32> to vector<2x256xf32>
    %56 = arith.mulf %55, %54 : vector<2x256xf32>
    %57 = arith.addf %53, %56 : vector<2x256xf32>
    %cst_24 = arith.constant 3.14159274 : f32
    %58 = vector.broadcast %cst_24 : f32 to vector<2x256xf32>
    %59 = arith.addf %57, %58 : vector<2x256xf32>
    %cst_25 = arith.constant 0.159154937 : f32
    %60 = vector.broadcast %cst_25 : f32 to vector<2x256xf32>
    %61 = arith.mulf %59, %60 : vector<2x256xf32>
    %62 = math.floor %61 : vector<2x256xf32>
    %cst_26 = arith.constant 6.28318548 : f32
    %63 = vector.broadcast %cst_26 : f32 to vector<2x256xf32>
    %64 = arith.mulf %63, %62 : vector<2x256xf32>
    %65 = arith.subf %57, %64 : vector<2x256xf32>
    %66 = tpu.concatenate %50, %65 in 0 : vector<4x256xf32>, vector<2x256xf32> -> vector<6x256xf32>
    %c0_27 = arith.constant 0 : index
    %67 = arith.index_cast %11 : i32 to index
    %68 = vector.load %arg11[%c0_27, %67] : memref<6x256xf32, #tpu.memory_space<vmem>>, vector<6x256xf32>
    tpu.vector_store %arg11[%c0_27, %67], %66 {strides = array<i32>} : memref<6x256xf32, #tpu.memory_space<vmem>>, vector<6x256xf32>,
    %c1_i32 = arith.constant 1 : i32
    return
  }
  func.func @transform_0(%arg0: i32) -> (i32, i32) {
    %c0_i32 = arith.constant 0 : i32
    %c0_i32_0 = arith.constant 0 : i32
    return %c0_i32, %arg0 : i32, i32
  }
  func.func @transform_1(%arg0: i32) -> (i32, i32) {
    %c0_i32 = arith.constant 0 : i32
    %c0_i32_0 = arith.constant 0 : i32
    return %c0_i32, %arg0 : i32, i32
  }
  func.func @transform_2(%arg0: i32) -> (i32, i32) {
    %c0_i32 = arith.constant 0 : i32
    %c0_i32_0 = arith.constant 0 : i32
    %c0_i32_1 = arith.constant 0 : i32
    return %c0_i32, %c0_i32_0 : i32, i32
  }
  func.func @transform_3(%arg0: i32) -> (i32, i32) {
    %c0_i32 = arith.constant 0 : i32
    %c0_i32_0 = arith.constant 0 : i32
    %c0_i32_1 = arith.constant 0 : i32
    return %c0_i32, %c0_i32_0 : i32, i32
  }
  func.func @transform_4(%arg0: i32) -> (i32, i32) {
    %c0_i32 = arith.constant 0 : i32
    %c0_i32_0 = arith.constant 0 : i32
    %c0_i32_1 = arith.constant 0 : i32
    return %c0_i32, %c0_i32_0 : i32, i32
  }
  func.func @transform_5(%arg0: i32) -> (i32, i32) {
    %c0_i32 = arith.constant 0 : i32
    %c0_i32_0 = arith.constant 0 : i32
    %c0_i32_1 = arith.constant 0 : i32
    return %c0_i32, %c0_i32_0 : i32, i32
  }
  func.func @transform_6(%arg0: i32) -> (i32, i32) {
    %c0_i32 = arith.constant 0 : i32
    %c0_i32_0 = arith.constant 0 : i32
    %c0_i32_1 = arith.constant 0 : i32
    return %c0_i32, %c0_i32_0 : i32, i32
  }
  func.func @transform_7(%arg0: i32) -> (i32, i32) {
    %c0_i32 = arith.constant 0 : i32
    %c0_i32_0 = arith.constant 0 : i32
    %c0_i32_1 = arith.constant 0 : i32
    return %c0_i32, %c0_i32_0 : i32, i32
  }
  func.func @transform_8(%arg0: i32) -> (i32, i32) {
    %c0_i32 = arith.constant 0 : i32
    %c0_i32_0 = arith.constant 0 : i32
    %c0_i32_1 = arith.constant 0 : i32
    return %c0_i32, %c0_i32_0 : i32, i32
  }
  func.func @transform_9(%arg0: i32) -> (i32, i32) {
    %c0_i32 = arith.constant 0 : i32
    %c0_i32_0 = arith.constant 0 : i32
    %c0_i32_1 = arith.constant 0 : i32
    return %c0_i32, %c0_i32_0 : i32, i32
  }
  func.func @transform_10(%arg0: i32) -> (i32, i32) {
    %c0_i32 = arith.constant 0 : i32
    %c0_i32_0 = arith.constant 0 : i32
    return %c0_i32, %arg0 : i32, i32
  }
}

</mosaic_0001>

<bundles_post_ra>
// kernel: traditional_ffbs_forward.1
= control target key start
LH: loop header
LB: loop body
LE: loop exit
PB: predicated region body
PF: predicated region fallthrough
CT: control target
= control target key end

     0   :  { %s1705_s13 = smov 0   ;;  %s2046_s0 = inlined_call_operand.vmem [shape: f32[6,512], index: 0, kind: input, shape index: {}]   ;;  %s2047_s1 = inlined_call_operand.vmem [shape: f32[6,512], index: 1, kind: input, shape index: {}]   ;;  %s2048_s2 = inlined_call_operand.vmem [shape: f32[64,8], index: 2, kind: input, shape index: {}]   ;;  %s2049_s3 = inlined_call_operand.vmem [shape: f32[64,1], index: 3, kind: input, shape index: {}]   ;;  %s2050_s4 = inlined_call_operand.vmem [shape: f32[64,64], index: 4, kind: input, shape index: {}]   ;;  %s2051_s5 = inlined_call_operand.vmem [shape: f32[64,1], index: 5, kind: input, shape index: {}]   ;;  %s2052_s6 = inlined_call_operand.vmem [shape: f32[8,64], index: 6, kind: input, shape index: {}]   ;;  %s2053_s7 = inlined_call_operand.vmem [shape: f32[8,1], index: 7, kind: input, shape index: {}]   ;;  %s2054_s8 = inlined_call_operand.vmem [shape: f32[8,1], index: 8, kind: input, shape index: {}]   ;;  %s2055_s9 = inlined_call_operand.vmem [shape: f32[6,1], index: 9, kind: input, shape index: {}]   ;;  %s2056_s10 = inlined_call_operand.vmem [shape: f32[6,512], index: 10, kind: output, shape index: {}]  }
   0x1 LB: > { %s1536_s14 = sadd.s32 4294967295, %s1639_s13   ;;  %p1540_p0 = scmp.ge.s32.totalorder %s1639_s13, 1  ;;  %s1639_s13 = sphi %s1705_s13, %s20_s13  }
   0x2   : > { %p324_p1 = scmp.lt.s32.totalorder %s1639_s13, 3 }
   0x4   : > { %p325_p2 = pnand %p1540_p0, %p324_p1 }
   0x5   : > { %s1541_s15 = sshll.u32 (!%p325_p2), %s1536_s14, 1 }
   0x6   : > { %328 = sbr.rel (%p325_p2) target bundleno = 919 (0x397), region = 60  ;;  %p368_p3 = scmp.lt.s32.totalorder (!%p325_p2), %s1541_s15, 3 }
   0xb   : > { %s2058_s15 = smov (!%p368_p3, %s1541_s15), 3  ;;  %v1641_v0 = vmov 0.0   ;;  %v398_v1 = vld [vmem:[%s2049_s3 + $0x28] sm:$0xff]  ;;  %v400_v2 = vld [vmem:[%s2049_s3 + $0x38] sm:$0xff]  ;;  %v1642_v5 = vmov 0   ;;  %v397_v10 = vld [vmem:[%s2049_s3 + $0x20] sm:$0xff] }
   0xc   : > { %980 = vmatprep.mubr.f32.mxu0 %v1641_v0  ;;  %1174 = vmatprep.mubr.f32.mxu1 %v1641_v0  ;;  %s1715_s16 = sshll.u32 %s2058_s15, 3  ;;  %v399_v11 = vld [vmem:[%s2049_s3 + $0x30] sm:$0xff]  ;;  %v396_v19 = vld [vmem:[%s2049_s3 + $0x18] sm:$0xff]  ;;  %v393_v25 = vld [vmem:[%s2049_s3] sm:$0xff]  ;;  %v1643_v34 = vmov 683565275  }
   0xd   : > { %s371_s19 = scalar_lea.vmem %s2046_s0, %s1715_s16  ;;  %1612 = vset.pattern.permute.xlu1 %v1642_v5  ;;  %1611 = vset.pattern.permute.xlu0 %v1642_v5  ;;  %v395_v18 = vld [vmem:[%s2049_s3 + $0x10] sm:$0xff]  ;;  %v394_v26 = vld [vmem:[%s2049_s3 + $0x8] sm:$0xff]  ;;  %v1644_v36 = vmov 2475754826   ;;  %v1645_v38 = vmov 2131351028   ;;  %s2013_s22 = scalar_lea.vmem %s2047_s1, %s1715_s16 }
   0xe   : > { %v1727_v3 = vld [vmem:[%s371_s19 + $0x8] sm:$0x3f]  ;;  %v1729_v4 = vld [vmem:[%s371_s19] sm:$0x3f]  ;;  %878 = vperm.xlu1 %1612, %v398_v1   ;;  %888 = vperm.xlu0 %1611, %v400_v2   ;;  %v1646_v40 = vmov 2102212464   ;;  %s383_s25 = scalar_lea.vmem %s2056_s10, %s1715_s16 }
   0xf   : > { %v529_v6 = vand.u32 2147483647, %v1727_v3  ;;  %v532_v7 = vand.u32 2139095040, %v1727_v3  ;;  %v425_v8 = vand.u32 2147483647, %v1729_v4  ;;  %v428_v9 = vand.u32 2139095040, %v1729_v4 }
  0x10   : > { %v1647_v42 = vmov 920167782   ;;  %v416_v45 = vld [vmem:[%s2051_s5 + $0x38] sm:$0xff]  ;;  %v415_v46 = vld [vmem:[%s2051_s5 + $0x30] sm:$0xff]  ;;  %v1648_v52 = vmov 1326507024  }
  0x11   : > { %v533_v12 = vshrl.u32 %v532_v7, 23  ;;  %v536_v13 = vand.u32 8388607, %v529_v6  ;;  %v429_v14 = vshrl.u32 %v428_v9, 23  ;;  %v432_v15 = vand.u32 8388607, %v425_v8 }
  0x12   : > { %873 = vperm.xlu1 %1612, %v397_v10   ;;  %883 = vperm.xlu0 %1611, %v399_v11   ;;  %v414_v61 = vld [vmem:[%s2051_s5 + $0x28] sm:$0xff]  ;;  %v413_v5 = vld [vmem:[%s2051_s5 + $0x20] sm:$0xff]  ;;  %vm531_vm14 = vcmp.lt.s32.totalorder %v1727_v3, 0  ;;  %vm530_vm15 = vcmp.le.f32.partialorder %v529_v6, 0.7853982 }
  0x13   : > { %v1551_v16 = vadd.s32 4294967169, %v533_v12  ;;  %v1547_v17 = vadd.s32 4294967169, %v429_v14  ;;  %v537_v21 = vor.u32 8388608, %v536_v13  ;;  %v433_v22 = vor.u32 8388608, %v432_v15 }
  0x15   : > { %v539_v20 = vadd.s32 1, %v1551_v16  ;;  %v435_v23 = vadd.s32 1, %v1547_v17  ;;  %v1757_v30 = vshll.u32 %v537_v21, 8  ;;  %v1761_v32 = vshll.u32 %v433_v22, 8 }
  0x16   : > { %863 = vperm.xlu1 %1612, %v395_v18   ;;  %868 = vperm.xlu0 %1611, %v396_v19  }
  0x17   : > { %vm540_vm0 = vcmp.gt.s32.totalorder %v539_v20, 0  ;;  %vm436_vm1 = vcmp.gt.s32.totalorder %v435_v23, 0 }
  0x18   : > { %v541_v24 = vsel %vm540_vm0, %v539_v20, 0  ;;  %v437_v29 = vsel %vm436_vm1, %v435_v23, 0  ;;  %v412_v20 = vld [vmem:[%s2051_s5 + $0x18] sm:$0xff]  ;;  %vm427_vm0 = vcmp.lt.s32.totalorder %v1729_v4, 0  ;;  %vm426_vm1 = vcmp.le.f32.partialorder %v425_v8, 0.7853982 }
  0x19   : > { %v542_v27 = vshrl.u32 %v541_v24, 5  ;;  %v543_v28 = vand.u32 31, %v541_v24  ;;  %v1759_v31 = vand.u32 31, %v437_v29  ;;  %v1763_v44 = vshrl.u32 %v437_v29, 5 }
  0x1a   : > { %853 = vperm.xlu1 %1612, %v393_v25   ;;  %858 = vperm.xlu0 %1611, %v394_v26   ;;  %v411_v25 = vld [vmem:[%s2051_s5 + $0x10] sm:$0xff] }
  0x1b   : > { %v544_v33 = vsub.s32 32, %v543_v28  ;;  %v546_v35 = vshll.u32 %v1643_v34, %v543_v28  ;;  %v549_v37 = vshll.u32 %v1644_v36, %v543_v28  ;;  %v552_v39 = vshll.u32 %v1645_v38, %v543_v28 }
  0x1c   : > { %v555_v41 = vshll.u32 %v1646_v40, %v543_v28  ;;  %v558_v43 = vshll.u32 %v1647_v42, %v543_v28  ;;  %vm561_vm2 = vcmp.lt.s32.totalorder %v542_v27, 1  ;;  %vm562_vm3 = vcmp.lt.s32.totalorder %v542_v27, 2 }
  0x1d   : > { %v545_v47 = vshrl.u32 %v1643_v34, %v544_v33  ;;  %v547_v48 = vshrl.u32 %v1644_v36, %v544_v33  ;;  %v550_v49 = vshrl.u32 %v1645_v38, %v544_v33  ;;  %v553_v50 = vshrl.u32 %v1646_v40, %v544_v33 }
  0x1e   : > { %v556_v51 = vshrl.u32 %v1647_v42, %v544_v33  ;;  %v559_v53 = vshrl.u32 %v1648_v52, %v544_v33  ;;  %vm564_vm4 = vcmp.lt.s32.totalorder %v542_v27, 4  ;;  %v440_v57 = vsub.s32 32, %v1759_v31  ;;  %1082 = vperm.xlu0 %1611, %v416_v45   ;;  %1077 = vperm.xlu1 %1612, %v415_v46  }
  0x1f   : > { %v548_v54 = vor.u32 %v547_v48, %v546_v35  ;;  %v551_v55 = vor.u32 %v550_v49, %v549_v37  ;;  %v554_v56 = vor.u32 %v553_v50, %v552_v39  ;;  %vm563_vm5 = vcmp.lt.s32.totalorder %v542_v27, 3 }
  0x20   : > { %v557_v58 = vor.u32 %v556_v51, %v555_v41  ;;  %v560_v59 = vor.u32 %v559_v53, %v558_v43  ;;  %v442_v60 = vshll.u32 %v1643_v34, %v1759_v31  ;;  %v445_v11 = vshll.u32 %v1644_v36, %v1759_v31  ;;  %v410_v41 = vld [vmem:[%s2051_s5 + $0x8] sm:$0xff]  ;;  %v418_v53 = vld [vmem:[%s2053_s7] sm:$0xff] }
  0x21   : > { %v565_v62 = vsel %vm561_vm2, %v545_v47, %v548_v54  ;;  %v566_v63 = vsel %vm564_vm4, %v554_v56, 2102212464  ;;  %v569_v1 = vsel %vm561_vm2, %v548_v54, %v551_v55  ;;  %v573_v2 = vsel %vm561_vm2, %v551_v55, %v554_v56 }
  0x22   : > { %v567_v7 = vsel %vm563_vm5, %v551_v55, %v566_v63  ;;  %v570_v9 = vsel %vm564_vm4, %v557_v58, 920167782  ;;  %v574_v10 = vsel %vm564_vm4, %v560_v59, 1326507024  ;;  %v441_v14 = vshrl.u32 %v1643_v34, %v440_v57  ;;  %1072 = vperm.xlu0 %1611, %v414_v61   ;;  %1067 = vperm.xlu1 %1612, %v413_v5  }
  0x23   : > { %v571_v12 = vsel %vm563_vm5, %v554_v56, %v570_v9  ;;  %v575_v13 = vsel %vm563_vm5, %v557_v58, %v574_v10  ;;  %v443_v15 = vshrl.u32 %v1644_v36, %v440_v57  ;;  %v568_v16 = vsel %vm562_vm3, %v565_v62, %v567_v7 }
  0x24   : > { %v572_v17 = vsel %vm562_vm3, %v569_v1, %v571_v12  ;;  %v576_v18 = vsel %vm562_vm3, %v573_v2, %v575_v13  ;;  %v446_v19 = vshrl.u32 %v1645_v38, %v440_v57  ;;  %v448_v28 = vshll.u32 %v1645_v38, %v1759_v31  ;;  %v420_v2 = vld [vmem:[%s2055_s9] sm:$0x3f] }
  0x25   : > { %v1793_v21 = vmul.u32.u64.low %v1757_v30, %v576_v18  ;;  %v1794_v22 = vmul.u32.u64.high %v1757_v30, %v576_v18, %v1793_v21  ;;  %v1797_v23 = vmul.u32.u64.low %v1757_v30, %v572_v17  ;;  %v1798_v24 = vmul.u32.u64.high %v1757_v30, %v572_v17, %v1797_v23 }
  0x26   : > { %v444_v26 = vor.u32 %v443_v15, %v442_v60  ;;  %v447_v27 = vor.u32 %v446_v19, %v445_v11  ;;  %v449_v29 = vshrl.u32 %v1646_v40, %v440_v57  ;;  %v451_v33 = vshll.u32 %v1646_v40, %v1759_v31  ;;  %1062 = vperm.xlu0 %1611, %v412_v20  }
  0x27   : > { %v452_v34 = vshrl.u32 %v1647_v42, %v440_v57  ;;  %v454_v35 = vshll.u32 %v1647_v42, %v1759_v31  ;;  %v455_v36 = vshrl.u32 %v1648_v52, %v440_v57  ;;  %v584_v37 = vmul.u32 %v1757_v30, %v568_v16  ;;  %1057 = vperm.xlu1 %1612, %v411_v25   ;;  %v409_v30 = vld [vmem:[%s2051_s5] sm:$0xff] }
  0x28   : > { %v450_v39 = vor.u32 %v449_v29, %v448_v28  ;;  %vm457_vm6 = vcmp.lt.s32.totalorder %v1763_v44, 1  ;;  %vm458_vm7 = vcmp.lt.s32.totalorder %v1763_v44, 2  ;;  %vm586_vm8 = vc.u32 %v1794_v22, %v1797_v23  ;;  %v419_v57 = vld [vmem:[%s2054_s8] sm:$0xff] }
  0x29   : > { %v587_v38 = vadd.s32 1, %v1798_v24  ;;  %v453_v31 = vor.u32 %v452_v34, %v451_v33  ;;  %vm459_vm9 = vcmp.lt.s32.totalorder %v1763_v44, 3  ;;  %v456_v40 = vor.u32 %v455_v36, %v454_v35 }
  0x2a   : > { %vm460_vm10 = vcmp.lt.s32.totalorder %v1763_v44, 4  ;;  %v461_v42 = vsel %vm457_vm6, %v441_v14, %v444_v26  ;;  %v465_v43 = vsel %vm457_vm6, %v444_v26, %v447_v27  ;;  %v469_v48 = vsel %vm457_vm6, %v447_v27, %v450_v39  ;;  %1052 = vperm.xlu0 %1611, %v410_v41  }
  0x2b   : > { %v588_v45 = vsel %vm586_vm8, %v587_v38, %v1798_v24  ;;  %v462_v46 = vsel %vm460_vm10, %v450_v39, 2102212464  ;;  %v466_v47 = vsel %vm460_vm10, %v453_v31, 920167782  ;;  %v470_v52 = vsel %vm460_vm10, %v456_v40, 1326507024  ;;  %1047 = vperm.xlu1 %1612, %v409_v30  }
  0x2c   : > { %v589_v49 = vadd.s32 %v588_v45, %v584_v37  ;;  %v463_v50 = vsel %vm459_vm9, %v447_v27, %v462_v46  ;;  %v467_v51 = vsel %vm459_vm9, %v450_v39, %v466_v47  ;;  %v471_v56 = vsel %vm459_vm9, %v453_v31, %v470_v52 }
  0x2d   : > { %v464_v54 = vsel %vm458_vm7, %v461_v42, %v463_v50  ;;  %v468_v55 = vsel %vm458_vm7, %v465_v43, %v467_v51  ;;  %v472_v59 = vsel %vm458_vm7, %v469_v48, %v471_v56  ;;  %vm621_vm8 = vweird.f32 %v1727_v3 }
  0x2e   : > { %v590_v58 = vadd.s32 536870912, %v589_v49  ;;  %v1847_v60 = vmul.u32.u64.low %v1761_v32, %v468_v55  ;;  %v1848_v61 = vmul.u32.u64.high %v1761_v32, %v468_v55, %v1847_v60  ;;  %1241 = vperm.xlu0 %1611, %v418_v53   ;;  %v480_v5 = vmul.u32 %v1761_v32, %v464_v54 }
  0x2f   : > { %v1851_v62 = vmul.u32.u64.low %v1761_v32, %v472_v59  ;;  %v1852_v63 = vmul.u32.u64.high %v1761_v32, %v472_v59, %v1851_v62  ;;  %1336 = vperm.xlu1 %1612, %v419_v57   ;;  %v585_v32 = vadd.s32 %v1797_v23, %v1794_v22  ;;  %vm845_vm9 = vcmask 1043456  }
  0x30   : > { %v591_v1 = vshrl.u32 %v590_v58, 30  ;;  %v483_v44 = vadd.s32 1, %v1848_v61  ;;  %vm848_vm10 = vcmask 1045504  }
  0x31   : > { %vm482_vm11 = vc.u32 %v1852_v63, %v1847_v60  ;;  %v481_v41 = vadd.s32 %v1847_v60, %v1852_v63 }
  0x32   : > { %v592_v7 = vshll.u32 %v591_v1, 30  ;;  %1345 = vperm.xlu0 %1611, %v420_v2   ;;  %v484_v10 = vsel %vm482_vm11, %v483_v44, %v1848_v61  ;;  %v615_v42 = vsub.s32 4, %v591_v1 }
  0x33   : > { %v485_v11 = vadd.s32 %v484_v10, %v480_v5 }
  0x34   : > { %v593_v9 = vsub.s32 %v589_v49, %v592_v7  ;;  %v616_v50 = vsel %vm531_vm14, %v615_v42, %v591_v1  ;;  %v392_v42 = vld [vmem:[%s2048_s2 + $0x38] sm:$0xff] }
  0x35   : > { %v486_v13 = vadd.s32 536870912, %v485_v11  ;;  %v618_v55 = vsel %vm530_vm15, 0, %v616_v50 }
  0x36   : > { %v595_v12 = vsub.s32 0, %v593_v9  ;;  %v622_v58 = vadd.s32 3, %v618_v55  ;;  %v829_v63 = vand.u32 3, %v618_v55 }
  0x37   : > { %v487_v15 = vshrl.u32 %v486_v13, 30 }
  0x38   : > { %v1552_v14 = vmin.u32 %v595_v12, %v593_v9  ;;  %v623_v62 = vand.u32 3, %v622_v58  ;;  %vm834_vm3 = vcmp.eq.s32.totalorder %v829_v63, 2  ;;  %vm831_vm5 = vcmp.eq.s32.totalorder %v829_v63, 0 }
  0x39   : > { %v488_v17 = vshll.u32 %v487_v15, 30  ;;  %v511_v57 = vsub.s32 4, %v487_v15  ;;  %vm830_vm7 = vcmp.lt.s32.totalorder %v829_v63, 2 }
  0x3a   : > { %v597_v16 = vclz %v1552_v14  ;;  %vm628_vm2 = vcmp.eq.s32.totalorder %v623_v62, 2  ;;  %vm625_vm4 = vcmp.eq.s32.totalorder %v623_v62, 0  ;;  %vm624_vm6 = vcmp.lt.s32.totalorder %v623_v62, 2 }
  0x3b   : > { %v489_v19 = vsub.s32 %v485_v11, %v488_v17  ;;  %v512_v60 = vsel %vm427_vm0, %v511_v57, %v487_v15 }
  0x3c   : > { %v1553_v18 = vadd.s32 4294967294, %v597_v16  ;;  %v514_v1 = vsel %vm426_vm1, 0, %v512_v60 }
  0x3d   : > { %v491_v21 = vsub.s32 0, %v489_v19  ;;  %v518_v44 = vadd.s32 3, %v514_v1  ;;  %v726_v16 = vand.u32 3, %v514_v1 }
  0x3e   : > { %vm1554_vm12 = vcmp.lt.s32.totalorder %v1553_v18, 0 }
  0x3f   : > { %v600_v20 = vsel %vm1554_vm12, 0, %v1553_v18  ;;  %v1548_v27 = vmin.u32 %v491_v21, %v489_v19  ;;  %v519_v15 = vand.u32 3, %v518_v44  ;;  %vm731_vm12 = vcmp.eq.s32.totalorder %v726_v16, 2 }
  0x40   : > { %v601_v24 = vsub.s32 32, %v600_v20  ;;  %v602_v25 = vshll.u32 %v593_v9, %v600_v20  ;;  %v605_v26 = vsub.s32 4294967266, %v600_v20 }
  0x41   : > { %v493_v33 = vclz %v1548_v27  ;;  %vm524_vm11 = vcmp.eq.s32.totalorder %v519_v15, 2 }
  0x42   : > { %v603_v28 = vshrl.u32 %v585_v32, %v601_v24  ;;  %v606_v29 = vadd.s32 127, %v605_v26 }
  0x43   : > { %v1549_v36 = vadd.s32 4294967294, %v493_v33 }
  0x44   : > { %v604_v34 = vor.u32 %v603_v28, %v602_v25  ;;  %v607_v35 = vshll.u32 %v606_v29, 23 }
  0x45   : > { %vm1550_vm13 = vcmp.lt.s32.totalorder %v1549_v36, 0 }
  0x46   : > { %v608_v37 = vor.u32 4788187, %v607_v35  ;;  %v611_v39 = vcvt.s32.f32 %v604_v34  ;;  %v496_v22 = vsel %vm1550_vm13, 0, %v1549_v36  ;;  %vm521_vm13 = vcmp.eq.s32.totalorder %v519_v15, 0 }
  0x47   : > { %v497_v23 = vsub.s32 32, %v496_v22  ;;  %v498_v31 = vshll.u32 %v489_v19, %v496_v22  ;;  %v501_v30 = vsub.s32 4294967266, %v496_v22  ;;  %v386_v22 = vld [vmem:[%s2048_s2 + $0x8] sm:$0xff] }
  0x48   : > { %v609_v38 = vand.u32 2147483647, %v608_v37 }
  0x49   : > { %v499_v43 = vshrl.u32 %v481_v41, %v497_v23  ;;  %v502_v45 = vadd.s32 127, %v501_v30  ;;  %v385_v41 = vld [vmem:[%s2048_s2] sm:$0xff]  ;;  %v388_v23 = vld [vmem:[%s2048_s2 + $0x18] sm:$0xff]  ;;  %v390_v30 = vld [vmem:[%s2048_s2 + $0x28] sm:$0xff] }
  0x4a   : > { %v612_v40 = vmul.f32 %v611_v39, %v609_v38 }
  0x4b   : > { %v500_v47 = vor.u32 %v499_v43, %v498_v31  ;;  %v503_v48 = vshll.u32 %v502_v45, 23  ;;  %v389_v31 = vld [vmem:[%s2048_s2 + $0x20] sm:$0xff] }
  0x4c   : > { %v613_v46 = vxor.u32 2147483648, %v612_v40 }
  0x4d   : > { %v504_v52 = vor.u32 4788187, %v503_v48  ;;  %v507_v53 = vcvt.s32.f32 %v500_v47 }
  0x4e   : > { %v614_v49 = vsel %vm531_vm14, %v613_v46, %v612_v40  ;;  %vm728_vm14 = vcmp.eq.s32.totalorder %v726_v16, 0  ;;  %v391_v40 = vld [vmem:[%s2048_s2 + $0x30] sm:$0xff] }
  0x4f   : > { %v617_v51 = vsel %vm530_vm15, %v1727_v3, %v614_v49  ;;  %v505_v54 = vand.u32 2147483647, %v504_v52  ;;  %vm520_vm15 = vcmp.lt.s32.totalorder %v519_v15, 2 }
  0x50   : > { %1613 = vcosq.f32 %v617_v51 }
  0x51   : > { %1615 = vsinq.f32 %v617_v51  ;;  %v508_v56 = vmul.f32 %v507_v53, %v505_v54 }
  0x53   : > { %v509_v6 = vxor.u32 2147483648, %v508_v56 }
  0x55   : > { %v510_v59 = vsel %vm427_vm0, %v509_v6, %v508_v56  ;;  %vm727_vm0 = vcmp.lt.s32.totalorder %v726_v16, 2 }
  0x56   : > { %v513_v61 = vsel %vm426_vm1, %v1729_v4, %v510_v59  ;;  %vm517_vm1 = vweird.f32 %v1729_v4 }
  0x57   : > { %1617 = vcosq.f32 %v513_v61 }
  0x58   : > { %1619 = vsinq.f32 %v513_v61 }
  0x5d   : > { %v1614_v2 = vpop.eup %1613 }
  0x5e   : > { %v1616_v5 = vpop.eup %1615  ;;  %v629_v7 = vxor.u32 2147483648, %v1614_v2 }
  0x5f   : > { %v626_v8 = vxor.u32 2147483648, %v1616_v5 }
  0x60   : > { %v630_v9 = vsel %vm628_vm2, %v629_v7, %v1616_v5  ;;  %v836_v10 = vsel %vm834_vm3, %v629_v7, %v1616_v5  ;;  %vm891_vm2 = vcmask 64512   ;;  %vm1085_vm3 = vcmask 523264  }
  0x61   : > { %v627_v11 = vsel %vm625_vm4, %v1614_v2, %v626_v8  ;;  %v833_v12 = vsel %vm831_vm5, %v1614_v2, %v626_v8 }
  0x62   : > { %v631_v13 = vsel %vm624_vm6, %v627_v11, %v630_v9  ;;  %v837_v14 = vsel %vm830_vm7, %v833_v12, %v836_v10 }
  0x63   : > { %v632_v17 = vsel %vm621_vm8, nan, %v631_v13  ;;  %v838_v18 = vsel %vm621_vm8, nan, %v837_v14 }
  0x64   : > { %v842_v19 = vrot.slane %v838_v18, 6  ;;  %v847_v32 = vsel %vm845_vm9, %v1727_v3, %v632_v17  ;;  %v1618_v20 = vpop.eup %1617 }
  0x65   : > { %v1620_v24 = vpop.eup %1619  ;;  %v525_v25 = vxor.u32 2147483648, %v1618_v20 }
  0x66   : > { %v1876_v21 = vsel %vm848_vm10, %v847_v32, %v842_v19  ;;  %v522_v26 = vxor.u32 2147483648, %v1620_v24 }
  0x67   : > { %946 = vmatprep.subr.mxu0 %v1876_v21  ;;  %v526_v27 = vsel %vm524_vm11, %v525_v25, %v1620_v24  ;;  %v733_v28 = vsel %vm731_vm12, %v525_v25, %v1620_v24 }
  0x68   : > { %v523_v3 = vsel %vm521_vm13, %v1618_v20, %v522_v26  ;;  %v730_v29 = vsel %vm728_vm14, %v1618_v20, %v522_v26 }
  0x69   : > { %v527_v33 = vsel %vm520_vm15, %v523_v3, %v526_v27  ;;  %v734_v34 = vsel %vm727_vm0, %v730_v29, %v733_v28 }
  0x6a   : > { %v528_v35 = vsel %vm517_vm1, nan, %v527_v33  ;;  %v735_v36 = vsel %vm517_vm1, nan, %v734_v34 }
  0x6b   : > { %v841_v37 = vrot.slane %v735_v36, 6  ;;  %v846_v39 = vsel %vm845_vm9, %v1729_v4, %v528_v35  ;;  %v387_v4 = vld [vmem:[%s2048_s2 + $0x10] sm:$0xff] }
  0x6d   : > { %v1886_v38 = vsel %vm848_vm10, %v846_v39, %v841_v37 }
  0x6e   : > { %947 = vmatpush1.msra.mxu0 %v1886_v38 }
  0x6f   : > { %1563 = vmatmul.mubr.msk.f32.vlgmr.msra.gmra.mxu0 %vm891_vm2, %v385_v41 }
  0x70   : > { %986 = vmatprep.mubr.f32.mxu0 %v1641_v0 }
  0x73   : > { %1564 = vmatmul.mubr.msk.f32.gmra.mxu0 %vm891_vm2, %v386_v22 }
  0x74   : > { %992 = vmatprep.mubr.f32.mxu0 %v1641_v0 }
  0x77   : > { %1565 = vmatmul.mubr.msk.f32.gmra.mxu0 %vm891_vm2, %v387_v4 }
  0x78   : > { %998 = vmatprep.mubr.f32.mxu0 %v1641_v0 }
  0x7b   : > { %1566 = vmatmul.mubr.msk.f32.gmra.mxu0 %vm891_vm2, %v388_v23  ;;  %v401_v23 = vld [vmem:[%s2050_s4] sm:$0xff] }
  0x7c   : > { %1004 = vmatprep.mubr.f32.mxu0 %v1641_v0 }
  0x7f   : > { %1567 = vmatmul.mubr.msk.f32.gmra.mxu0 %vm891_vm2, %v389_v31  ;;  %v402_v31 = vld [vmem:[%s2050_s4 + $0x8] sm:$0xff] }
  0x80   : > { %1010 = vmatprep.mubr.f32.mxu0 %v1641_v0 }
  0x83   : > { %1568 = vmatmul.mubr.msk.f32.gmra.mxu0 %vm891_vm2, %v390_v30  ;;  %v403_v30 = vld [vmem:[%s2050_s4 + $0x10] sm:$0xff] }
  0x84   : > { %1016 = vmatprep.mubr.f32.mxu0 %v1641_v0 }
  0x87   : > { %1569 = vmatmul.mubr.msk.f32.gmra.mxu0 %vm891_vm2, %v391_v40  ;;  %v404_v40 = vld [vmem:[%s2050_s4 + $0x18] sm:$0xff] }
  0x88   : > { %1022 = vmatprep.mubr.f32.mxu0 %v1641_v0 }
  0x89   : > { %v889_v55 = vpop.permute.xlu0 %888  ;;  %v879_v57 = vpop.permute.xlu1 %878 }
  0x8b   : > { %1570 = vmatmul.mubr.msk.f32.gmra.mxu0 %vm891_vm2, %v392_v42  ;;  %v405_v42 = vld [vmem:[%s2050_s4 + $0x20] sm:$0xff] }
  0x8c   : > { %1311 = vmatprep.mubr.f32.mxu0 %v1641_v0 }
  0x8d   : > { %v884_v59 = vpop.permute.xlu0 %883  ;;  %v874_v61 = vpop.permute.xlu1 %873 }
  0x91   : > { %v869_v7 = vpop.permute.xlu0 %868  ;;  %v864_v11 = vpop.permute.xlu1 %863 }
  0x95   : > { %v859_v32 = vpop.permute.xlu0 %858  ;;  %v854_v27 = vpop.permute.xlu1 %853 }
 0x12f   : > { %v982_v43 = vpop.f32.mrf.mxu0 }
 0x130   : > { %v983_v36 = vadd.f32 %v982_v43, %v854_v27  ;;  %v406_v43 = vld [vmem:[%s2050_s4 + $0x28] sm:$0xff] }
 0x131   : > { %v984_v45 = vpop.f32.mrf.mxu0 }
 0x132   : > { %v985_v34 = vadd.f32 %v984_v45, %v854_v27  ;;  %v1029_v4 = vmax.f32 %v983_v36, 0.0  ;;  %v407_v45 = vld [vmem:[%s2050_s4 + $0x30] sm:$0xff] }
 0x133   : > { %v988_v46 = vpop.f32.mrf.mxu0 }
 0x134   : > { %v989_v29 = vadd.f32 %v988_v46, %v859_v32  ;;  %v1030_v22 = vmax.f32 %v985_v34, 0.0  ;;  %v408_v46 = vld [vmem:[%s2050_s4 + $0x38] sm:$0xff] }
 0x135   : > { %v990_v47 = vpop.f32.mrf.mxu0 }
 0x136   : > { %v991_v28 = vadd.f32 %v990_v47, %v859_v32  ;;  %v1031_v41 = vmax.f32 %v989_v29, 0.0 }
 0x137   : > { %v994_v48 = vpop.f32.mrf.mxu0 }
 0x138   : > { %v995_v25 = vadd.f32 %v994_v48, %v864_v11  ;;  %v1032_v39 = vmax.f32 %v991_v28, 0.0 }
 0x139   : > { %v996_v49 = vpop.f32.mrf.mxu0 }
 0x13a   : > { %v997_v20 = vadd.f32 %v996_v49, %v864_v11  ;;  %v1033_v37 = vmax.f32 %v995_v25, 0.0 }
 0x13b   : > { %v1000_v50 = vpop.f32.mrf.mxu0 }
 0x13c   : > { %v1001_v18 = vadd.f32 %v1000_v50, %v869_v7  ;;  %v1034_v35 = vmax.f32 %v997_v20, 0.0 }
 0x13d   : > { %v1002_v51 = vpop.f32.mrf.mxu0 }
 0x13e   : > { %v1003_v16 = vadd.f32 %v1002_v51, %v869_v7  ;;  %v1035_v33 = vmax.f32 %v1001_v18, 0.0 }
 0x13f   : > { %v1006_v52 = vpop.f32.mrf.mxu0 }
 0x140   : > { %v1007_v14 = vadd.f32 %v1006_v52, %v874_v61  ;;  %v1036_v3 = vmax.f32 %v1003_v16, 0.0 }
 0x141   : > { %v1008_v53 = vpop.f32.mrf.mxu0 }
 0x142   : > { %v1009_v12 = vadd.f32 %v1008_v53, %v874_v61  ;;  %v1037_v26 = vmax.f32 %v1007_v14, 0.0 }
 0x143   : > { %v1012_v54 = vpop.f32.mrf.mxu0 }
 0x144   : > { %v1013_v9 = vadd.f32 %v1012_v54, %v879_v57  ;;  %v1038_v24 = vmax.f32 %v1009_v12, 0.0 }
 0x145   : > { %v1014_v56 = vpop.f32.mrf.mxu0 }
 0x146   : > { %v1015_v44 = vadd.f32 %v1014_v56, %v879_v57  ;;  %v1039_v19 = vmax.f32 %v1013_v9, 0.0 }
 0x147   : > { %v1018_v58 = vpop.f32.mrf.mxu0 }
 0x148   : > { %v1019_v5 = vadd.f32 %v1018_v58, %v884_v59  ;;  %v1040_v17 = vmax.f32 %v1015_v44, 0.0  ;;  %v1083_v58 = vpop.permute.xlu0 %1082 }
 0x149   : > { %v1020_v6 = vpop.f32.mrf.mxu0 }
 0x14a   : > { %v1021_v1 = vadd.f32 %v1020_v6, %v884_v59  ;;  %v1041_v15 = vmax.f32 %v1019_v5, 0.0  ;;  %v1078_v59 = vpop.permute.xlu1 %1077 }
 0x14b   : > { %v1024_v60 = vpop.f32.mrf.mxu0 }
 0x14c   : > { %v1025_v62 = vadd.f32 %v1024_v60, %v889_v55  ;;  %v1042_v13 = vmax.f32 %v1021_v1, 0.0 }
 0x14d   : > { %v1026_v63 = vpop.f32.mrf.mxu0 }
 0x14e   : > { %v1027_v2 = vadd.f32 %v1026_v63, %v889_v55  ;;  %v1043_v10 = vmax.f32 %v1025_v62, 0.0  ;;  %v1073_v62 = vpop.permute.xlu0 %1072  ;;  %v1068_v1 = vpop.permute.xlu1 %1067 }
 0x150   : > { %v1044_v8 = vmax.f32 %v1027_v2, 0.0 }
 0x152   : > { %1126 = vmatprep.subr.mxu1 %v1044_v8  ;;  %v1063_v11 = vpop.permute.xlu0 %1062  ;;  %v1058_v16 = vpop.permute.xlu1 %1057 }
 0x153   : > { %1127 = vmatpush1.msra.mxu1 %v1043_v10 }
 0x154   : > { %1128 = vmatprep.subr.mxu1 %v1042_v13 }
 0x155   : > { %1129 = vmatpush1.msra.mxu1 %v1041_v15 }
 0x156   : > { %1130 = vmatprep.subr.mxu1 %v1040_v17  ;;  %v1053_v27 = vpop.permute.xlu0 %1052  ;;  %v1048_v34 = vpop.permute.xlu1 %1047 }
 0x157   : > { %1131 = vmatpush1.msra.mxu1 %v1039_v19 }
 0x158   : > { %1132 = vmatprep.subr.mxu1 %v1038_v24 }
 0x159   : > { %1133 = vmatpush1.msra.mxu1 %v1037_v26 }
 0x15a   : > { %1134 = vmatprep.subr.mxu1 %v1036_v3 }
 0x15b   : > { %1135 = vmatpush1.msra.mxu1 %v1035_v33 }
 0x15c   : > { %1136 = vmatprep.subr.mxu1 %v1034_v35 }
 0x15d   : > { %1137 = vmatpush1.msra.mxu1 %v1033_v37 }
 0x15e   : > { %1138 = vmatprep.subr.mxu1 %v1032_v39 }
 0x15f   : > { %1139 = vmatpush1.msra.mxu1 %v1031_v41 }
 0x160   : > { %1140 = vmatprep.subr.mxu1 %v1030_v22 }
 0x161   : > { %1141 = vmatpush1.msra.mxu1 %v1029_v4 }
 0x162   : > { %1571 = vmatmul.mubr.msk.f32.vlgmr.msra.gmra.mxu1 %vm1085_vm3, %v401_v23 }
 0x163   : > { %1180 = vmatprep.mubr.f32.mxu1 %v1641_v0 }
 0x166   : > { %1572 = vmatmul.mubr.msk.f32.gmra.mxu1 %vm1085_vm3, %v402_v31 }
 0x167   : > { %1186 = vmatprep.mubr.f32.mxu1 %v1641_v0 }
 0x16a   : > { %1573 = vmatmul.mubr.msk.f32.gmra.mxu1 %vm1085_vm3, %v403_v30 }
 0x16b   : > { %1192 = vmatprep.mubr.f32.mxu1 %v1641_v0 }
 0x16e   : > { %1574 = vmatmul.mubr.msk.f32.gmra.mxu1 %vm1085_vm3, %v404_v40  ;;  %v417_v40 = vld [vmem:[%s2052_s6] sm:$0xff] }
 0x16f   : > { %1198 = vmatprep.mubr.f32.mxu1 %v1641_v0 }
 0x172   : > { %1575 = vmatmul.mubr.msk.f32.gmra.mxu1 %vm1085_vm3, %v405_v42  ;;  %v1242_v42 = vpop.permute.xlu0 %1241 }
 0x173   : > { %1204 = vmatprep.mubr.f32.mxu1 %v1641_v0 }
 0x176   : > { %1576 = vmatmul.mubr.msk.f32.gmra.mxu1 %vm1085_vm3, %v406_v43 }
 0x177   : > { %1210 = vmatprep.mubr.f32.mxu1 %v1641_v0 }
 0x17a   : > { %1577 = vmatmul.mubr.msk.f32.gmra.mxu1 %vm1085_vm3, %v407_v45 }
 0x17b   : > { %1216 = vmatprep.mubr.f32.mxu1 %v1641_v0 }
 0x17e   : > { %1578 = vmatmul.mubr.msk.f32.gmra.mxu1 %vm1085_vm3, %v408_v46 }
 0x222   : > { %v1176_v47 = vpop.f32.mrf.mxu1 }
 0x223   : > { %v1177_v41 = vadd.f32 %v1176_v47, %v1048_v34 }
 0x224   : > { %v1178_v48 = vpop.f32.mrf.mxu1 }
 0x225   : > { %v1179_v37 = vadd.f32 %v1178_v48, %v1048_v34  ;;  %v1223_v30 = vmax.f32 %v1177_v41, 0.0 }
 0x226   : > { %v1182_v49 = vpop.f32.mrf.mxu1 }
 0x227   : > { %v1183_v35 = vadd.f32 %v1182_v49, %v1053_v27  ;;  %v1224_v31 = vmax.f32 %v1179_v37, 0.0 }
 0x228   : > { %v1184_v50 = vpop.f32.mrf.mxu1 }
 0x229   : > { %v1185_v29 = vadd.f32 %v1184_v50, %v1053_v27  ;;  %v1225_v23 = vmax.f32 %v1183_v35, 0.0 }
 0x22a   : > { %v1188_v51 = vpop.f32.mrf.mxu1 }
 0x22b   : > { %v1189_v28 = vadd.f32 %v1188_v51, %v1058_v16  ;;  %v1226_v4 = vmax.f32 %v1185_v29, 0.0 }
 0x22c   : > { %v1190_v52 = vpop.f32.mrf.mxu1 }
 0x22d   : > { %v1191_v25 = vadd.f32 %v1190_v52, %v1058_v16  ;;  %v1227_v22 = vmax.f32 %v1189_v28, 0.0 }
 0x22e   : > { %v1194_v53 = vpop.f32.mrf.mxu1 }
 0x22f   : > { %v1195_v20 = vadd.f32 %v1194_v53, %v1063_v11  ;;  %v1228_v39 = vmax.f32 %v1191_v25, 0.0 }
 0x230   : > { %v1196_v54 = vpop.f32.mrf.mxu1 }
 0x231   : > { %v1197_v19 = vadd.f32 %v1196_v54, %v1063_v11  ;;  %v1229_v36 = vmax.f32 %v1195_v20, 0.0 }
 0x232   : > { %v1200_v55 = vpop.f32.mrf.mxu1 }
 0x233   : > { %v1201_v17 = vadd.f32 %v1200_v55, %v1068_v1  ;;  %v1230_v33 = vmax.f32 %v1197_v19, 0.0 }
 0x234   : > { %v1202_v56 = vpop.f32.mrf.mxu1 }
 0x235   : > { %v1203_v14 = vadd.f32 %v1202_v56, %v1068_v1  ;;  %v1231_v3 = vmax.f32 %v1201_v17, 0.0 }
 0x236   : > { %v1206_v57 = vpop.f32.mrf.mxu1 }
 0x237   : > { %v1207_v12 = vadd.f32 %v1206_v57, %v1073_v62  ;;  %v1232_v26 = vmax.f32 %v1203_v14, 0.0 }
 0x238   : > { %v1208_v6 = vpop.f32.mrf.mxu1 }
 0x239   : > { %v1209_v9 = vadd.f32 %v1208_v6, %v1073_v62  ;;  %v1233_v24 = vmax.f32 %v1207_v12, 0.0  ;;  %v1337_v6 = vpop.permute.xlu1 %1336 }
 0x23a   : > { %v1212_v60 = vpop.f32.mrf.mxu1 }
 0x23b   : > { %v1213_v8 = vadd.f32 %v1212_v60, %v1078_v59  ;;  %v1234_v32 = vmax.f32 %v1209_v9, 0.0 }
 0x23c   : > { %v1214_v61 = vpop.f32.mrf.mxu1 }
 0x23d   : > { %v1215_v7 = vadd.f32 %v1214_v61, %v1078_v59  ;;  %v1235_v18 = vmax.f32 %v1213_v8, 0.0 }
 0x23e   : > { %v1218_v63 = vpop.f32.mrf.mxu1 }
 0x23f   : > { %v1219_v2 = vadd.f32 %v1218_v63, %v1083_v58  ;;  %v1236_v15 = vmax.f32 %v1215_v7, 0.0 }
 0x240   : > { %v1220_v5 = vpop.f32.mrf.mxu1 }
 0x241   : > { %v1221_v44 = vadd.f32 %v1220_v5, %v1083_v58  ;;  %v1237_v13 = vmax.f32 %v1219_v2, 0.0 }
 0x243   : > { %v1238_v10 = vmax.f32 %v1221_v44, 0.0 }
 0x245   : > { %1263 = vmatprep.subr.mxu0 %v1238_v10 }
 0x246   : > { %1264 = vmatpush1.msra.mxu0 %v1237_v13 }
 0x247   : > { %1265 = vmatprep.subr.mxu0 %v1236_v15 }
 0x248   : > { %1266 = vmatpush1.msra.mxu0 %v1235_v18 }
 0x249   : > { %1267 = vmatprep.subr.mxu0 %v1234_v32 }
 0x24a   : > { %1268 = vmatpush1.msra.mxu0 %v1233_v24 }
 0x24b   : > { %1269 = vmatprep.subr.mxu0 %v1232_v26 }
 0x24c   : > { %1270 = vmatpush1.msra.mxu0 %v1231_v3 }
 0x24d   : > { %1271 = vmatprep.subr.mxu0 %v1230_v33 }
 0x24e   : > { %1272 = vmatpush1.msra.mxu0 %v1229_v36 }
 0x24f   : > { %1273 = vmatprep.subr.mxu0 %v1228_v39 }
 0x250   : > { %1274 = vmatpush1.msra.mxu0 %v1227_v22 }
 0x251   : > { %1275 = vmatprep.subr.mxu0 %v1226_v4 }
 0x252   : > { %1276 = vmatpush1.msra.mxu0 %v1225_v23 }
 0x253   : > { %1277 = vmatprep.subr.mxu0 %v1224_v31 }
 0x254   : > { %1278 = vmatpush1.msra.mxu0 %v1223_v30 }
 0x255   : > { %1579 = vmatmul.mubr.msk.f32.vlgmr.msra.gmra.mxu0 %vm1085_vm3, %v417_v40 }
 0x315   : > { %v1313_v43 = vpop.f32.mrf.mxu0 }
 0x316   : > { %v1314_v45 = vadd.f32 %v1313_v43, %v1242_v42 }
 0x317   : > { %v1315_v46 = vpop.f32.mrf.mxu0 }
 0x318   : > { %v1580_v47 = vmul.f32 -1.442695, %v1314_v45  ;;  %v1316_v48 = vadd.f32 %v1315_v46, %v1242_v42 }
 0x31a   : > { %1621 = vpow2.f32 %v1580_v47  ;;  %v1581_v49 = vmul.f32 -1.442695, %v1316_v48 }
 0x31c   : > { %1623 = vpow2.f32 %v1581_v49 }
 0x327   : > { %v1622_v50 = vpop.eup %1621 }
 0x328   : > { %v1324_v51 = vadd.f32 1.0, %v1622_v50 }
 0x329   : > { %v1624_v52 = vpop.eup %1623 }
 0x32a   : > { %1625 = vrcp.f32 %v1324_v51  ;;  %v1325_v53 = vadd.f32 1.0, %v1624_v52 }
 0x32c   : > { %1627 = vrcp.f32 %v1325_v53 }
 0x337   : > { %v1626_v54 = vpop.eup %1625 }
 0x338   : > { %v1330_v55 = vmul.f32 2.0, %v1626_v54 }
 0x339   : > { %v1628_v56 = vpop.eup %1627 }
 0x33a   : > { %v1582_v57 = vadd.f32 -1.0, %v1330_v55  ;;  %v1331_v58 = vmul.f32 2.0, %v1628_v56 }
 0x33c   : > { %v1339_v59 = vmul.f32 %v1582_v57, %v1337_v6  ;;  %v1583_v60 = vadd.f32 -1.0, %v1331_v58 }
 0x33e   : > { %v1970_v61 = vadd.f32 %v1339_v59, %v1886_v38  ;;  %v1340_v62 = vmul.f32 %v1583_v60, %v1337_v6  ;;  %v1649_v59 = vmov 0.7853982  }
 0x340   : > { %v1973_v63 = vrot.slane %v1970_v61, 2  ;;  %v1976_v1 = vadd.f32 %v1340_v62, %v1876_v21  ;;  %v1982_v5 = vand.u32 2147483647, %v1970_v61  ;;  %vm1390_vm8 = vcmp.eq.f32.partialorder %v1970_v61, 0.0 }
 0x341   : > { %vm1393_vm11 = vcmp.ne.f32.partialorder %v1970_v61, %v1970_v61 }
 0x342   : > { %v1979_v2 = vand.u32 2147483647, %v1973_v63  ;;  %v1987_v44 = vrot.slane %v1976_v1, 2  ;;  %v1993_v8 = vand.u32 2147483647, %v1976_v1  ;;  %vm1388_vm5 = vcmp.lt.s32.totalorder %v1973_v63, 0 }
 0x343   : > { %vm1392_vm6 = vcmp.ne.f32.partialorder %v1973_v63, %v1973_v63  ;;  %vm1385_vm7 = vcmp.lt.f32.partialorder %v1973_v63, 0.0  ;;  %v1389_v56 = vsel %vm1388_vm5, 3.1415927, %v1641_v0  ;;  %vm1399_vm13 = vcmp.eq.s32.totalorder %v1982_v5, inf  ;;  %v1346_v63 = vpop.permute.xlu0 %1345 }
 0x344   : > { %v1361_v7 = vmax.f32 %v1979_v2, %v1982_v5  ;;  %v1990_v38 = vand.u32 2147483647, %v1987_v44  ;;  %v1360_v9 = vmin.f32 %v1979_v2, %v1982_v5  ;;  %vm1382_vm4 = vcmp.gt.f32.partialorder %v1982_v5, %v1979_v2  ;;  %vm1394_vm12 = vmor %vm1392_vm6, %vm1393_vm11 }
 0x345   : > { %vm1398_vm10 = vcmp.eq.s32.totalorder %v1979_v2, inf  ;;  %v1397_v60 = vsel %vm1385_vm7, 2.3561945, %v1649_v59  ;;  %vm1435_vm0 = vcmp.lt.s32.totalorder %v1987_v44, 0  ;;  %v423_v2 = vld [vmem:[%s2013_s22] sm:$0x3f]  ;;  %vm1439_vm1 = vcmp.ne.f32.partialorder %v1987_v44, %v1987_v44 }
 0x346   : > { %1629 = vrcp.f32 %v1361_v7  ;;  %v1408_v21 = vmax.f32 %v1990_v38, %v1993_v8  ;;  %v1407_v13 = vmin.f32 %v1990_v38, %v1993_v8  ;;  %vm1429_vm14 = vcmp.gt.f32.partialorder %v1993_v8, %v1990_v38  ;;  %vm1400_vm15 = vmand %vm1398_vm10, %vm1399_vm13 }
 0x347   : > { %v1403_v5 = vand.u32 2147483648, %v1970_v61  ;;  %vm1432_vm2 = vcmp.lt.f32.partialorder %v1987_v44, 0.0  ;;  %vm1445_vm3 = vcmp.eq.s32.totalorder %v1990_v38, inf  ;;  %vm1440_vm5 = vcmp.ne.f32.partialorder %v1976_v1, %v1976_v1  ;;  %v424_v44 = vld [vmem:[%s2013_s22 + $0x8] sm:$0x3f] }
 0x348   : > { %1631 = vrcp.f32 %v1408_v21  ;;  %vm1441_vm6 = vmor %vm1439_vm1, %vm1440_vm5 }
 0x353   : > { %v1630_v10 = vpop.eup %1629 }
 0x354   : > { %v1363_v11 = vmul.f32 %v1630_v10, %v1360_v9 }
 0x355   : > { %v1632_v14 = vpop.eup %1631 }
 0x356   : > { %v1364_v12 = vmul.f32 %v1363_v11, %v1363_v11  ;;  %v1410_v16 = vmul.f32 %v1632_v14, %v1407_v13 }
 0x358   : > { %v1365_v15 = vmul.f32 0.002785687, %v1364_v12  ;;  %v1411_v18 = vmul.f32 %v1410_v16, %v1410_v16 }
 0x35a   : > { %v1366_v17 = vadd.f32 -0.015866, %v1365_v15  ;;  %v1412_v32 = vmul.f32 0.002785687, %v1411_v18 }
 0x35c   : > { %v1367_v19 = vmul.f32 %v1366_v17, %v1364_v12  ;;  %v1413_v24 = vadd.f32 -0.015866, %v1412_v32  ;;  %v1349_v32 = vmul.f32 %v1346_v63, %v424_v44 }
 0x35e   : > { %v1368_v20 = vadd.f32 0.04247222, %v1367_v19  ;;  %v1414_v26 = vmul.f32 %v1413_v24, %v1411_v18 }
 0x360   : > { %v1369_v25 = vmul.f32 %v1368_v20, %v1364_v12  ;;  %v1415_v28 = vadd.f32 0.04247222, %v1414_v26 }
 0x362   : > { %v1370_v27 = vadd.f32 -0.074975304, %v1369_v25  ;;  %v1416_v29 = vmul.f32 %v1415_v28, %v1411_v18 }
 0x364   : > { %v1371_v3 = vmul.f32 %v1370_v27, %v1364_v12  ;;  %v1417_v34 = vadd.f32 -0.074975304, %v1416_v29 }
 0x366   : > { %v1372_v33 = vadd.f32 0.1064488, %v1371_v3  ;;  %v1418_v36 = vmul.f32 %v1417_v34, %v1411_v18 }
 0x368   : > { %v1373_v35 = vmul.f32 %v1372_v33, %v1364_v12  ;;  %v1419_v39 = vadd.f32 0.1064488, %v1418_v36  ;;  %v1351_v36 = vadd.f32 %v1349_v32, %v1976_v1 }
 0x36a   : > { %v1374_v37 = vadd.f32 -0.14207031, %v1373_v35  ;;  %v1420_v22 = vmul.f32 %v1419_v39, %v1411_v18 }
 0x36c   : > { %v1375_v41 = vmul.f32 %v1374_v37, %v1364_v12  ;;  %v1421_v23 = vadd.f32 -0.14207031, %v1420_v22 }
 0x36e   : > { %v1376_v4 = vadd.f32 0.19993454, %v1375_v41  ;;  %v1422_v30 = vmul.f32 %v1421_v23, %v1411_v18 }
 0x370   : > { %v1377_v31 = vmul.f32 %v1376_v4, %v1364_v12  ;;  %v1423_v42 = vadd.f32 0.19993454, %v1422_v30 }
 0x372   : > { %v1378_v40 = vadd.f32 -0.33333147, %v1377_v31  ;;  %v1424_v45 = vmul.f32 %v1423_v42, %v1411_v18 }
 0x374   : > { %v1379_v43 = vmul.f32 %v1378_v40, %v1364_v12  ;;  %v1425_v47 = vadd.f32 -0.33333147, %v1424_v45  ;;  %v1348_v12 = vmul.f32 %v1346_v63, %v423_v2 }
 0x376   : > { %v1380_v46 = vmul.f32 %v1379_v43, %v1363_v11  ;;  %v1426_v49 = vmul.f32 %v1425_v47, %v1411_v18 }
 0x378   : > { %v1381_v48 = vadd.f32 %v1380_v46, %v1363_v11  ;;  %v1427_v51 = vmul.f32 %v1426_v49, %v1410_v16  ;;  %v1436_v11 = vsel %vm1435_vm0, 3.1415927, %v1641_v0  ;;  %v1450_v0 = vand.u32 2147483648, %v1976_v1 }
 0x37a   : > { %v1383_v50 = vsub.f32 1.5707964, %v1381_v48  ;;  %v1428_v54 = vadd.f32 %v1427_v51, %v1410_v16  ;;  %v1444_v16 = vsel %vm1432_vm2, 2.3561945, %v1649_v59 }
 0x37c   : > { %v1384_v52 = vsel %vm1382_vm4, %v1383_v50, %v1381_v48  ;;  %v1430_v57 = vsub.f32 1.5707964, %v1428_v54  ;;  %vm1437_vm4 = vcmp.eq.f32.partialorder %v1976_v1, 0.0 }
 0x37d   : > { %v1386_v53 = vsub.f32 3.1415927, %v1384_v52 }
 0x37e   : > { %v1431_v62 = vsel %vm1429_vm14, %v1430_v57, %v1428_v54 }
 0x37f   : > { %v1387_v55 = vsel %vm1385_vm7, %v1386_v53, %v1384_v52  ;;  %v1433_v21 = vsub.f32 3.1415927, %v1431_v62  ;;  %vm1446_vm7 = vcmp.eq.s32.totalorder %v1993_v8, inf  ;;  %v1350_v8 = vadd.f32 %v1348_v12, %v1970_v61 }
 0x380   : > { %v1391_v58 = vsel %vm1390_vm8, %v1389_v56, %v1387_v55  ;;  %vm1447_vm8 = vmand %vm1445_vm3, %vm1446_vm7 }
 0x381   : > { %v1395_v6 = vsel %vm1394_vm12, nan, %v1391_v58  ;;  %v1434_v10 = vsel %vm1432_vm2, %v1433_v21, %v1431_v62 }
 0x382   : > { %v1401_v7 = vsel %vm1400_vm15, %v1397_v60, %v1395_v6  ;;  %v1438_v14 = vsel %vm1437_vm4, %v1436_v11, %v1434_v10 }
 0x383   : > { %v1402_v9 = vand.u32 2147483647, %v1401_v7  ;;  %v1442_v15 = vsel %vm1441_vm6, nan, %v1438_v14 }
 0x384   : > { %v1448_v17 = vsel %vm1447_vm8, %v1444_v16, %v1442_v15 }
 0x385   : > { %v1404_v13 = vor.u32 %v1403_v5, %v1402_v9  ;;  %v1449_v18 = vand.u32 2147483647, %v1448_v17 }
 0x387   : > { %v1452_v38 = vadd.f32 %v1404_v13, %v1348_v12  ;;  %v1451_v20 = vor.u32 %v1450_v0, %v1449_v18 }
 0x389   : > { %v1454_v19 = vadd.f32 3.1415927, %v1452_v38  ;;  %v1453_v25 = vadd.f32 %v1451_v20, %v1349_v32 }
 0x38b   : > { %v1456_v24 = vmul.f32 0.15915494, %v1454_v19  ;;  %v1455_v27 = vadd.f32 3.1415927, %v1453_v25 }
 0x38d   : > { %v1458_v26 = vfloor.f32 %v1456_v24  ;;  %v1457_v3 = vmul.f32 0.15915494, %v1455_v27 }
 0x38f   : > { %v1460_v28 = vmul.f32 6.2831855, %v1458_v26  ;;  %v1459_v33 = vfloor.f32 %v1457_v3 }
 0x391   : > { %v1462_v29 = vsub.f32 %v1452_v38, %v1460_v28  ;;  %v1461_v35 = vmul.f32 6.2831855, %v1459_v33 }
 0x393   : > { %v1464_v34 = vsel %vm845_vm9, %v1350_v8, %v1462_v29  ;;  %v1463_v37 = vsub.f32 %v1453_v25, %v1461_v35 }
 0x394   : > { %1466 = vst [vmem:[%s383_s25] sm:$0x3f] %v1464_v34 }
 0x395   : > { %v1465_v39 = vsel %vm845_vm9, %v1351_v36, %v1463_v37 }
 0x396   : > { %1467 = vst [vmem:[%s383_s25 + $0x8] sm:$0x3f] %v1465_v39 }
 0x397 PF: > { %s20_s13 = sadd.s32 1, %s1639_s13  }
 0x398   : > { %p17_p4 = scmp.ge.s32.totalorder %s20_s13, 4  }
 0x39a   :  { %19 = sbr.rel (!%p17_p4) target bundleno = 1 (0x1), region = 93 }

</bundles_post_ra>
